<compile_context>
chip_gen: v7x
topology: tpu7x:2x2x1
jax: 0.10.0
libtpu: 0.0.40
codegen_flags: <defaults>
</compile_context>

<pallas_src>
import math

import jax
import jax.numpy as jnp
from jax.experimental import pallas as pl
from jax.experimental.pallas import tpu as pltpu


def _embed_kernel(x_ref, xm_ref, w1p_ref, b1t_ref, w2p_ref, b2t_ref, o_ref):
    """One grid step: `tr` super-rows, each packing `k` flattened rows lane-wise.

    x_ref : (tr, k)              raw x values; column s holds flattened row r*k+s
    xm_ref: (tr, k*d_inp)        time features; segment s at cols [s*d_inp, (s+1)*d_inp)
    w1p   : (k, W)               kron(eye(k), w1)  -> segment s of x@w1p = x_s * w1
    b1t   : (1, W)               b1 tiled across the k segments
    w2p   : (k*d_inp, W)         kron(eye(k), w2)
    b2t   : (1, W)               b2 tiled across the k segments
    o_ref : (tr, W)              lane-dense output block (W = k*d_model)
    """
    x = x_ref[...].astype(jnp.float32)
    xm = xm_ref[...].astype(jnp.float32)

    lin = jnp.dot(x, w1p_ref[...], preferred_element_type=jnp.float32,
                  precision=jax.lax.Precision.HIGHEST) + b1t_ref[...]
    lin = jnp.maximum(lin, 0.0)

    te = jnp.dot(xm, w2p_ref[...], preferred_element_type=jnp.float32,
                 precision=jax.lax.Precision.HIGHEST) + b2t_ref[...]

    o_ref[...] = (lin + te).astype(o_ref.dtype)


def _cdiv(a, b):
    return -(-a // b)


def _round_up(a, b):
    return _cdiv(a, b) * b


def data_embedding_2(x, x_mark, w1, b1, w2, b2, *, rows_per_tile=8192,
                     out_dtype=jnp.float32):
    """Pallas implementation of DataEmbedding_2.forward (eval mode).

    x:      any shape, total N elements (torch does x.reshape(-1, 1, 1))
    x_mark: N * d_inp elements, one d_inp feature vector per flattened x element
    w1: (1, d_model)      b1: (d_model,) or (1, d_model)
    w2: (d_inp, d_model)  b2: (d_model,) or (1, d_model)
    returns: (N, 1, d_model) in out_dtype (float32 by default, matching torch)
    """
    d_model = w1.shape[-1]
    d_inp = w2.shape[0]
    N = x.size
    assert x_mark.size == N * d_inp, (
        "x_mark must supply exactly one length-d_inp feature vector per flattened x row")

    # Lane-packing factor: pack k consecutive flattened rows into one lane-dense row.
    if d_model % 128 == 0:
        k = 1
    else:
        k = math.lcm(d_model, 128) // d_model
        if k * d_model > 512:          # keep packed weights / output tiles small
            k = 1
    W = k * d_model

    n_super = _cdiv(N, k)
    pad_rows = n_super * k - N         # < k; usually 0, so usually no pad op at all

    # Flatten inputs; keep their dtype through the DMA (cast to f32 inside kernel).
    x_flat = x.reshape(-1)
    xm_flat = x_mark.reshape(-1)
    if pad_rows:
        x_flat = jnp.pad(x_flat, (0, pad_rows))
        xm_flat = jnp.pad(xm_flat, (0, pad_rows * d_inp))
    x2 = x_flat.reshape(n_super, k)                    # contiguous reshape (free)
    xm2 = xm_flat.reshape(n_super, k * d_inp)          # contiguous reshape (free)

    # Packed / tiled parameters (tiny; built once per call).
    eye = jnp.eye(k, dtype=jnp.float32)
    w1_2d = w1.reshape(1, d_model).astype(jnp.float32)
    b1_2d = b1.reshape(1, d_model).astype(jnp.float32)
    w2_2d = w2.reshape(d_inp, d_model).astype(jnp.float32)
    b2_2d = b2.reshape(1, d_model).astype(jnp.float32)
    w1p = jnp.kron(eye, w1_2d)                          # (k, W)
    w2p = jnp.kron(eye, w2_2d)                          # (k*d_inp, W)
    b1t = jnp.tile(b1_2d, (1, k))                       # (1, W)
    b2t = jnp.tile(b2_2d, (1, k))                       # (1, W)

    # Row tile (in super-rows).
    if n_super <= 8:
        tr = n_super                                    # full-extent block (tiny input)
    else:
        tr = max(8, (rows_per_tile // k) // 8 * 8)
        # Ensure >= 2 grid steps so both v7x TensorCores get work (cheap elsewhere).
        tr = min(tr, _round_up(_cdiv(n_super, 2), 8))
        # Keep double-buffered x / x_mark / out blocks comfortably inside scoped VMEM.
        bytes_per_super_row = 2 * (max(k, 128) * 4 + max(k * d_inp, 128) * 4 + W * 4)
        tr_cap = max(8, ((12 << 20) // bytes_per_super_row) // 8 * 8)
        tr = min(tr, tr_cap)

    grid = (_cdiv(n_super, tr),)

    out = pl.pallas_call(
        _embed_kernel,
        out_shape=jax.ShapeDtypeStruct((n_super, W), out_dtype),
        grid=grid,
        in_specs=[
            pl.BlockSpec((tr, k), lambda i: (i, 0)),            # x rows
            pl.BlockSpec((tr, k * d_inp), lambda i: (i, 0)),    # x_mark rows
            pl.BlockSpec((k, W), lambda i: (0, 0)),             # W1 packed (resident)
            pl.BlockSpec((1, W), lambda i: (0, 0)),             # b1 tiled
            pl.BlockSpec((k * d_inp, W), lambda i: (0, 0)),     # W2 packed (resident)
            pl.BlockSpec((1, W), lambda i: (0, 0)),             # b2 tiled
        ],
        out_specs=pl.BlockSpec((tr, W), lambda i: (i, 0)),      # lane-dense output
        compiler_params=pltpu.CompilerParams(
            dimension_semantics=("parallel",)),
    )(x2, xm2, w1p, b1t, w2p, b2t)

    # Undo the lane packing (contiguous reshape + slice; free).
    out = out.reshape(n_super * k, d_model)[:N]
    return out.reshape(N, 1, d_model)


def _reference(x, x_mark, w1, b1, w2, b2):
    d_model = w1.shape[-1]
    d_inp = w2.shape[0]
    N = x.size
    x2 = x.reshape(N, 1).astype(jnp.float32)
    xm2 = x_mark.reshape(N, d_inp).astype(jnp.float32)
    lin = jnp.maximum(x2 @ w1.reshape(1, d_model) + b1.reshape(1, d_model), 0.0)
    te = xm2 @ w2.reshape(d_inp, d_model) + b2.reshape(1, d_model)
    return (lin + te).reshape(N, 1, d_model)


if __name__ == "__main__":
    B, L = 2, 8          # batch, sequence length (x is univariate: feature dim 1)
    d_model = 32         # -> lane-pack factor k = 4 (output rows are 128 lanes wide)
    d_inp = 5            # freq='t' -> 5 time features

    key = jax.random.PRNGKey(0)
    k1, k2, k3, k4, k5, k6 = jax.random.split(key, 6)

    # inputs (torch: x.reshape(-1,1,1) -> N = B*L rows; one x_mark vector per row)
    x = jax.random.normal(k1, (B, L, 1), dtype=jnp.float32)
    x_mark = jax.random.normal(k2, (B * L, 1, d_inp), dtype=jnp.float32)

    # parameters (nn.Linear(1, d_model) / nn.Linear(d_inp, d_model)), stored
    # transposed as (in_features, out_features)
    w1 = jax.random.normal(k3, (1, d_model), dtype=jnp.float32) * 0.5
    b1 = jax.random.normal(k4, (d_model,), dtype=jnp.float32) * 0.1
    w2 = jax.random.normal(k5, (d_inp, d_model), dtype=jnp.float32) * 0.5
    b2 = jax.random.normal(k6, (d_model,), dtype=jnp.float32) * 0.1

    out = data_embedding_2(x, x_mark, w1, b1, w2, b2)
    out = jax.block_until_ready(out)

    ref = _reference(x, x_mark, w1, b1, w2, b2)
    assert out.shape == (B * L, 1, d_model)
    assert jnp.allclose(out, ref, atol=1e-4, rtol=1e-4)

    print("KERNEL_OK")
</pallas_src>

<mosaic_0001>
module attributes {stable_mosaic.version = 11 : i64} {
  func.func @_embed_kernel(%arg0: i32, %arg1: memref<4x4xf32, #tpu.memory_space<vmem>>, %arg2: memref<4x20xf32, #tpu.memory_space<vmem>>, %arg3: memref<4x128xf32, #tpu.memory_space<vmem>>, %arg4: memref<1x128xf32, #tpu.memory_space<vmem>>, %arg5: memref<20x128xf32, #tpu.memory_space<vmem>>, %arg6: memref<1x128xf32, #tpu.memory_space<vmem>>, %arg7: memref<4x128xf32, #tpu.memory_space<vmem>>) attributes {dimension_semantics = [#tpu.dimension_semantics<parallel>], iteration_bounds = array<i64: 1>, scalar_prefetch = 0 : i64, scratch_operands = 0 : i64, tpu.core_type = #tpu.core_type<tc>, window_params = [{transform_indices = @transform_0, window_bounds = array<i64: 4, 4>}, {transform_indices = @transform_1, window_bounds = array<i64: 4, 20>}, {pipeline_mode = #tpu.pipeline_mode<synchronous>, transform_indices = @transform_2, window_bounds = array<i64: 4, 128>}, {pipeline_mode = #tpu.pipeline_mode<synchronous>, transform_indices = @transform_3, window_bounds = array<i64: 1, 128>}, {pipeline_mode = #tpu.pipeline_mode<synchronous>, transform_indices = @transform_4, window_bounds = array<i64: 20, 128>}, {pipeline_mode = #tpu.pipeline_mode<synchronous>, transform_indices = @transform_5, window_bounds = array<i64: 1, 128>}, {transform_indices = @transform_6, window_bounds = array<i64: 4, 128>}]} {
    %c0 = arith.constant 0 : index
    %c0_0 = arith.constant 0 : index
    %0 = vector.load %arg1[%c0, %c0_0] : memref<4x4xf32, #tpu.memory_space<vmem>>, vector<4x4xf32>
    %c0_1 = arith.constant 0 : index
    %c0_2 = arith.constant 0 : index
    %1 = vector.load %arg2[%c0_1, %c0_2] : memref<4x20xf32, #tpu.memory_space<vmem>>, vector<4x20xf32>
    %c0_3 = arith.constant 0 : index
    %c0_4 = arith.constant 0 : index
    %2 = vector.load %arg3[%c0_3, %c0_4] : memref<4x128xf32, #tpu.memory_space<vmem>>, vector<4x128xf32>
    %cst = arith.constant dense<0.000000e+00> : vector<4x128xf32>
    %3 = tpu.matmul %0, %2, %cst {dimension_numbers = #tpu.dot_dimension_numbers<[1], [0], [0], [1], [0, 0, 1, 1], [], []>, precision = #tpu.contract_precision<fp32>} : vector<4x4xf32>, vector<4x128xf32>, vector<4x128xf32> -> vector<4x128xf32>
    %c0_5 = arith.constant 0 : index
    %c0_6 = arith.constant 0 : index
    %4 = vector.load %arg4[%c0_5, %c0_6] : memref<1x128xf32, #tpu.memory_space<vmem>>, vector<1x128xf32>
    %5 = vector.broadcast %4 : vector<1x128xf32> to vector<4x128xf32>
    %6 = arith.addf %3, %5 : vector<4x128xf32>
    %cst_7 = arith.constant 0.000000e+00 : f32
    %7 = vector.broadcast %cst_7 : f32 to vector<4x128xf32>
    %8 = arith.maximumf %6, %7 : vector<4x128xf32>
    %c0_8 = arith.constant 0 : index
    %c0_9 = arith.constant 0 : index
    %9 = vector.load %arg5[%c0_8, %c0_9] : memref<20x128xf32, #tpu.memory_space<vmem>>, vector<20x128xf32>
    %cst_10 = arith.constant dense<0.000000e+00> : vector<4x128xf32>
    %10 = tpu.matmul %1, %9, %cst_10 {dimension_numbers = #tpu.dot_dimension_numbers<[1], [0], [0], [1], [0, 0, 1, 1], [], []>, precision = #tpu.contract_precision<fp32>} : vector<4x20xf32>, vector<20x128xf32>, vector<4x128xf32> -> vector<4x128xf32>
    %c0_11 = arith.constant 0 : index
    %c0_12 = arith.constant 0 : index
    %11 = vector.load %arg6[%c0_11, %c0_12] : memref<1x128xf32, #tpu.memory_space<vmem>>, vector<1x128xf32>
    %12 = vector.broadcast %11 : vector<1x128xf32> to vector<4x128xf32>
    %13 = arith.addf %10, %12 : vector<4x128xf32>
    %14 = arith.addf %8, %13 : vector<4x128xf32>
    %c0_13 = arith.constant 0 : index
    %c0_14 = arith.constant 0 : index
    %15 = vector.load %arg7[%c0_13, %c0_14] : memref<4x128xf32, #tpu.memory_space<vmem>>, vector<4x128xf32>
    tpu.vector_store %arg7[%c0_13, %c0_14], %14 {strides = array<i32>} : memref<4x128xf32, #tpu.memory_space<vmem>>, vector<4x128xf32>,
    return
  }
  func.func @transform_0(%arg0: i32) -> (i32, i32) {
    %c0_i32 = arith.constant 0 : i32
    %c0_i32_0 = arith.constant 0 : i32
    return %arg0, %c0_i32 : i32, i32
  }
  func.func @transform_1(%arg0: i32) -> (i32, i32) {
    %c0_i32 = arith.constant 0 : i32
    %c0_i32_0 = arith.constant 0 : i32
    return %arg0, %c0_i32 : i32, i32
  }
  func.func @transform_2(%arg0: i32) -> (i32, i32) {
    %c0_i32 = arith.constant 0 : i32
    %c0_i32_0 = arith.constant 0 : i32
    %c0_i32_1 = arith.constant 0 : i32
    return %c0_i32, %c0_i32_0 : i32, i32
  }
  func.func @transform_3(%arg0: i32) -> (i32, i32) {
    %c0_i32 = arith.constant 0 : i32
    %c0_i32_0 = arith.constant 0 : i32
    %c0_i32_1 = arith.constant 0 : i32
    return %c0_i32, %c0_i32_0 : i32, i32
  }
  func.func @transform_4(%arg0: i32) -> (i32, i32) {
    %c0_i32 = arith.constant 0 : i32
    %c0_i32_0 = arith.constant 0 : i32
    %c0_i32_1 = arith.constant 0 : i32
    return %c0_i32, %c0_i32_0 : i32, i32
  }
  func.func @transform_5(%arg0: i32) -> (i32, i32) {
    %c0_i32 = arith.constant 0 : i32
    %c0_i32_0 = arith.constant 0 : i32
    %c0_i32_1 = arith.constant 0 : i32
    return %c0_i32, %c0_i32_0 : i32, i32
  }
  func.func @transform_6(%arg0: i32) -> (i32, i32) {
    %c0_i32 = arith.constant 0 : i32
    %c0_i32_0 = arith.constant 0 : i32
    return %arg0, %c0_i32 : i32, i32
  }
}

</mosaic_0001>

<bundles_post_ra>
// kernel: tpu_custom_call.1
= control target key start
LH: loop header
LB: loop body
LE: loop exit
PB: predicated region body
PF: predicated region fallthrough
CT: control target
= control target key end

     0   :  { %11 = vsyncpa [#allocation3], 0  ;;  %s1482_s0 = inlined_call_operand.hbm [shape: f32[4,4], index: 0, kind: input, shape index: {}]   ;;  %s1483_s1 = inlined_call_operand.hbm [shape: f32[4,20], index: 1, kind: input, shape index: {}]   ;;  %s1484_s2 = inlined_call_operand.vmem [shape: f32[4,128], index: 2, kind: input, shape index: {}]   ;;  %s1485_s3 = inlined_call_operand.vmem [shape: f32[1,128], index: 3, kind: input, shape index: {}]   ;;  %s1486_s4 = inlined_call_operand.hbm [shape: f32[20,128], index: 4, kind: input, shape index: {}]   ;;  %s1487_s5 = inlined_call_operand.vmem [shape: f32[1,128], index: 5, kind: input, shape index: {}]   ;;  %s1488_s6 = inlined_call_operand.hbm [shape: f32[4,128], index: 6, kind: output, shape index: {}]  }
   0x1   :  { %12 = vsyncpa [#allocation6], 0 }
   0x2   :  { %13 = vsyncpa [#allocation4], 0  ;;  %s1287_s21 = smov [#allocation5]   ;;  %s1288_s23 = smov [#allocation2]  }
   0x3   :  { %s30_s22 = sshll.u32 %s1287_s21, 4  ;;  %s20_s24 = sshll.u32 %s1288_s23, 4  ;;  %s31_s22 = int_to_ptr.vmem [resolvable:$true] %s30_s22  ;;  %s21_s24 = int_to_ptr.vmem [resolvable:$true] %s20_s24 }
   0x4   :  { %s1193_s27 = scalar_lea.hbm %s1483_s1, 64 }
   0x5   :  { %p1194_p0 = scmp.ne.s32.totalorder %s1483_s1, %s1193_s27  ;;  %p1197_p1 = scmp.lt.u32.totalorder %s1193_s27, %s1483_s1 }
   0x7   :  { %p1199_p2 = pnand %p1197_p1, %p1194_p0 }
   0x9   :  { %1202 = shalt.err (!%p1199_p2)
}
   0xa   :  { %s1203_s8 = scalar_lea.vmem %s31_s22, 64  ;;  %p1208_p4 = scmp.lt.s32.totalorder %s31_s22, %s31_s22 }
   0xb   :  { %p1204_p3 = scmp.ne.s32.totalorder %s31_s22, %s1203_s8  ;;  %p1209_p5 = scmp.lt.s32.totalorder %s1203_s8, %s1203_s8 }
   0xd   :  { %p1210_p6 = por %p1209_p5, %p1208_p4 }
   0xf   :  { %p1211_p7 = pnand %p1210_p6, %p1204_p3 }
  0x11   :  { %1214 = shalt.err (!%p1211_p7)
}
  0x12   :  { %33 = dma.hbm_to_vmem [thread:$0]  %s1483_s1, 64, %s31_s22, [#allocation6]  }
  0x13   :  { %s1215_s13 = scalar_lea.hbm %s1482_s0, 64 }
  0x14   :  { %p1216_p8 = scmp.ne.s32.totalorder %s1482_s0, %s1215_s13  ;;  %p1219_p9 = scmp.lt.u32.totalorder %s1215_s13, %s1482_s0 }
  0x16   :  { %p1221_p10 = pnand %p1219_p9, %p1216_p8 }
  0x18   :  { %1224 = shalt.err (!%p1221_p10)
}
  0x19   :  { %s1225_s18 = scalar_lea.vmem %s21_s24, 64  ;;  %p1230_p12 = scmp.lt.s32.totalorder %s21_s24, %s21_s24 }
  0x1a   :  { %p1226_p11 = scmp.ne.s32.totalorder %s21_s24, %s1225_s18  ;;  %p1231_p13 = scmp.lt.s32.totalorder %s1225_s18, %s1225_s18 }
  0x1c   :  { %p1232_p0 = por %p1231_p13, %p1230_p12 }
  0x1e   :  { %p1233_p1 = pnand %p1232_p0, %p1226_p11 }
  0x20   :  { %1236 = shalt.err (!%p1233_p1)
}
  0x21   :  { %23 = dma.hbm_to_vmem [thread:$0]  %s1482_s0, 64, %s21_s24, [#allocation3]  }
  0x22   :  { %s1289_s20 = smov [#allocation7]   ;;  %s1237_s25 = scalar_lea.hbm %s1486_s4, 384 }
  0x23   :  { %s43_s21 = sshll.u32 %s1289_s20, 4  ;;  %p1238_p2 = scmp.ne.s32.totalorder %s1486_s4, %s1237_s25  ;;  %s44_s21 = int_to_ptr.vmem [resolvable:$true] %s43_s21 }
  0x24   :  { %p1241_p3 = scmp.lt.u32.totalorder %s1237_s25, %s1486_s4 }
  0x26   :  { %p1243_p4 = pnand %p1241_p3, %p1238_p2 }
  0x28   :  { %1246 = shalt.err (!%p1243_p4)
}
  0x29   :  { %s1247_s30 = scalar_lea.vmem %s44_s21, 384  ;;  %p1252_p6 = scmp.lt.s32.totalorder %s44_s21, %s44_s21 }
  0x2a   :  { %p1248_p5 = scmp.ne.s32.totalorder %s44_s21, %s1247_s30  ;;  %p1253_p7 = scmp.lt.s32.totalorder %s1247_s30, %s1247_s30 }
  0x2c   :  { %p1254_p8 = por %p1253_p7, %p1252_p6 }
  0x2e   :  { %p1255_p9 = pnand %p1254_p8, %p1248_p5 }
  0x30   :  { %1258 = shalt.err (!%p1255_p9)
}
  0x31   :  { %s1290_s0 = smov 128   ;;  %s1291_s24 = smov 8  }
  0x32   :  { %49 = dma.hbm_to_vmem [thread:$0]  %s1486_s4, 384, %s44_s21, [#allocation6], %s1290_s0, %s1290_s0, %s1291_s24  }
  0x33   :  { %1281 = dma.done.wait [#allocation3], 64  }
  0x34   :  { %1282 = vsyncadd [#allocation3], 4294967232 }
  0x35   :  { %1283 = dma.done.wait [#allocation6], 448  }
  0x36   :  { %1284 = vsyncadd [#allocation6], 4294966848  ;;  %v1292_v0 = vmov 0.0   ;;  %vm1293_vm0 = vmmov 0   ;;  %v1294_v1 = vmov 0.0|0.0   ;;  %vm75_vm1 = vcmask 1043456  }
  0x37   :  { %1071 = vmatprep.subr.mxu0 %v1292_v0  ;;  %1073 = vmatprep.mubr.msk.f32.mxu0 %vm1293_vm0, %v1292_v0  ;;  %vm71_vm2 = vcmask 31744   ;;  %v63_v2 = vld [vmem:[%s1484_s2] sm:$0xf]  ;;  %v526_v4 = vld [vmem:[#allocation7] sm:$0xff]  ;;  %vm536_vm3 = vcmask 162816   ;;  %v527_v7 = vld [vmem:[#allocation7 + $0x8] sm:$0xff] }
  0x38   :  { %1155 = vmatprep.subr.bf16.mxu1 %v1294_v1  ;;  %1107 = vmatprep.mubr.msk.f32.mxu1 %vm1293_vm0, %v1292_v0  ;;  %v61_v3 = vld [vmem:[#allocation2] sm:$0xf]  ;;  %v77_v5 = vsel %vm75_vm1, %v63_v2, 0  ;;  %v544_v8 = vand.u32 4294901760, %v526_v4  ;;  %v528_v9 = vld [vmem:[#allocation7 + $0x10] sm:$0xf] }
  0x39   :  { %v73_v6 = vsel %vm71_vm2, %v61_v3, 0  ;;  %v1376_v10 = vand.u32 4294901760, %v77_v5  ;;  %v547_v12 = vand.u32 4294901760, %v527_v7  ;;  %v541_v13 = vsel %vm75_vm1, %v528_v9, 0  ;;  %v62_v14 = vld [vmem:[#allocation5] sm:$0xf] }
  0x3a   :  { %v1378_v11 = vand.u32 4294901760, %v73_v6  ;;  %v1380_v15 = vsub.f32 %v526_v4, %v544_v8  ;;  %v1382_v16 = vand.u32 4294901760, %v541_v13  ;;  %v538_v17 = vsel %vm536_vm3, %v62_v14, 0  ;;  %v1034_v48 = vld [vmem:[%s1487_s5] ss:$0 sm:$0xff]  ;;  %s1295_s5 = smov [#allocation8]  }
  0x3b   :  { %1072 = vmatpush3.msra.mxu0 %v1376_v10  ;;  %v157_v18 = vsub.f32 %v77_v5, %v1376_v10  ;;  %v1387_v20 = vpack.c.bf16 %v547_v12, %v544_v8  ;;  %v1389_v21 = vsub.f32 %v527_v7, %v547_v12  ;;  %v1395_v23 = vand.u32 4294901760, %v538_v17  ;;  %v1033_v63 = vld [vmem:[%s1485_s3] ss:$0 sm:$0xff]  ;;  %s1023_s13 = sshll.u32 %s1295_s5, 4  ;;  %s1024_s13 = int_to_ptr.vmem [resolvable:$true] %s1023_s13 }
  0x3c   :  { %v146_v19 = vsub.f32 %v73_v6, %v1378_v11  ;;  %1076 = vmatprep.subr.mxu0 %v1292_v0  ;;  %v1393_v22 = vsub.f32 %v541_v13, %v1382_v16  ;;  %v624_v24 = vand.u32 4294901760, %v1380_v15  ;;  %s1259_s14 = scalar_lea.vmem %s1024_s13, 64  ;;  %p1264_p11 = scmp.lt.s32.totalorder %s1024_s13, %s1024_s13 }
  0x3d   :  { %v158_v26 = vand.u32 4294901760, %v157_v18  ;;  %1157 = vmatpush3.bf16.msra.mxu1 %v1387_v20  ;;  %v631_v27 = vand.u32 4294901760, %v1389_v21  ;;  %v612_v28 = vsub.f32 %v538_v17, %v1395_v23  ;;  %v1162_v44 = vpack.c.bf16 %v1389_v21, %v1380_v15  ;;  %p1260_p10 = scmp.ne.s32.totalorder %s1024_s13, %s1259_s14  ;;  %p1265_p12 = scmp.lt.s32.totalorder %s1259_s14, %s1259_s14 }
  0x3e   :  { %v147_v25 = vand.u32 4294901760, %v146_v19  ;;  %1105 = vmatprep.subr.mxu1 %v1292_v0  ;;  %v625_v29 = vsub.f32 %v1380_v15, %v624_v24  ;;  %v638_v33 = vand.u32 4294901760, %v1393_v22 }
  0x3f   :  { %v159_v31 = vsub.f32 %v157_v18, %v158_v26  ;;  %v632_v32 = vsub.f32 %v1389_v21, %v631_v27  ;;  %v613_v34 = vand.u32 4294901760, %v612_v28  ;;  %v1168_v45 = vpack.c.bf16 %v631_v27, %v624_v24  ;;  %p1266_p13 = por %p1265_p12, %p1264_p11 }
  0x40   :  { %v148_v30 = vsub.f32 %v146_v19, %v147_v25  ;;  %v626_v35 = vand.u32 4294901760, %v625_v29  ;;  %v639_v41 = vsub.f32 %v1393_v22, %v638_v33 }
  0x41   :  { %v160_v37 = vand.u32 4294901760, %v159_v31  ;;  %1106 = vmatpush3.msra.mxu1 %v1382_v16  ;;  %v633_v38 = vand.u32 4294901760, %v632_v32  ;;  %v614_v39 = vsub.f32 %v612_v28, %v613_v34  ;;  %p1267_p0 = pnand %p1266_p13, %p1260_p10 }
  0x42   :  { %v149_v36 = vand.u32 4294901760, %v148_v30  ;;  %1158 = vmatprep.subr.bf16.mxu1 %v1294_v1  ;;  %v640_v43 = vand.u32 4294901760, %v639_v41 }
  0x43   :  { %v1159_v40 = vpack.c.bf16 %v633_v38, %v626_v35  ;;  %v615_v42 = vand.u32 4294901760, %v614_v39 }
  0x44   :  { %1074 = vmatmul.mubr.f32.vlgmr.msra.gmra.mrb[0].mxu0 %v149_v36 }
  0x45   :  { %1077 = vmatpush3.msra.mxu0 %v160_v37  ;;  %1078 = vmatprep.mubr.msk.f32.mxu0 %vm1293_vm0, %v1292_v0 }
  0x46   :  { %1081 = vmatprep.subr.mxu0 %v1292_v0  ;;  %1108 = vmatmul.mubr.f32.vlgmr.msra.gmra.mrb[0].mxu1 %v615_v42 }
  0x47   :  { %1160 = vmatpush3.bf16.msra.mxu1 %v1159_v40  ;;  %1116 = vmatprep.mubr.msk.f32.mxu1 %vm1293_vm0, %v1292_v0 }
  0x48   :  { %1114 = vmatprep.subr.mxu1 %v1292_v0 }
  0x4b   :  { %1115 = vmatpush3.msra.mxu1 %v640_v43 }
  0x4c   :  { %1079 = vmatmul.mubr.f32.vlgmr.msra.gmra.mrb[0].mxu0 %v1378_v11  ;;  %1161 = vmatprep.subr.bf16.mxu1 %v1294_v1 }
  0x4d   :  { %1082 = vmatpush3.msra.mxu0 %v157_v18  ;;  %1083 = vmatprep.mubr.msk.f32.mxu0 %vm1293_vm0, %v1292_v0 }
  0x4e   :  { %1086 = vmatprep.subr.mxu0 %v1292_v0  ;;  %1117 = vmatmul.mubr.f32.vlgmr.msra.gmra.mrb[2].mxu1 %v1395_v23 }
  0x4f   :  { %1163 = vmatpush3.bf16.msra.mxu1 %v1162_v44  ;;  %1125 = vmatprep.mubr.msk.f32.mxu1 %vm1293_vm0, %v1292_v0 }
  0x50   :  { %1123 = vmatprep.subr.mxu1 %v1292_v0 }
  0x53   :  { %1124 = vmatpush3.msra.mxu1 %v1393_v22 }
  0x54   :  { %1084 = vmatmul.mubr.f32.vlgmr.msra.gmra.mrb[0].mxu0 %v146_v19  ;;  %1164 = vmatprep.subr.bf16.mxu1 %v1294_v1 }
  0x55   :  { %1087 = vmatpush3.msra.mxu0 %v1376_v10  ;;  %1088 = vmatprep.mubr.msk.f32.mxu0 %vm1293_vm0, %v1292_v0 }
  0x56   :  { %1091 = vmatprep.subr.mxu0 %v1292_v0  ;;  %1126 = vmatmul.mubr.f32.vlgmr.msra.gmra.mrb[4].mxu1 %v612_v28 }
  0x57   :  { %1166 = vmatpush3.bf16.msra.mxu1 %v1387_v20  ;;  %1134 = vmatprep.mubr.msk.f32.mxu1 %vm1293_vm0, %v1292_v0 }
  0x58   :  { %1132 = vmatprep.subr.mxu1 %v1292_v0 }
  0x5b   :  { %1133 = vmatpush3.msra.mxu1 %v1382_v16 }
  0x5c   :  { %1089 = vmatmul.mubr.f32.vlgmr.msra.gmra.mrb[0].mxu0 %v147_v25  ;;  %1135 = vmatmul.mubr.f32.vlgmr.msra.gmra.mrb[6].mxu1 %v613_v34 }
  0x5d   :  { %1092 = vmatpush3.msra.mxu0 %v158_v26  ;;  %1093 = vmatprep.mubr.msk.f32.mxu0 %vm1293_vm0, %v1292_v0 }
  0x5e   :  { %1096 = vmatprep.subr.mxu0 %v1292_v0  ;;  %1170 = vmatprep.subr.bf16.mxu1 %v1294_v1 }
  0x5f   :  { %1152 = vmatprep.mubr.msk.f32.mxu1 %vm1293_vm0, %v1292_v0  ;;  %1172 = vmatpush3.bf16.msra.mxu1 %v1387_v20 }
  0x60   :  { %1150 = vmatprep.subr.mxu1 %v1292_v0 }
  0x63   :  { %1151 = vmatpush3.msra.mxu1 %v1382_v16 }
  0x64   :  { %1094 = vmatmul.mubr.f32.vlgmr.msra.gmra.mrb[0].mxu0 %v1378_v11  ;;  %1153 = vmatmul.mubr.f32.vlgmr.msra.gmra.mrb[8].mxu1 %v1395_v23 }
  0x65   :  { %1097 = vmatpush3.msra.mxu0 %v1376_v10  ;;  %1098 = vmatprep.mubr.msk.f32.mxu0 %vm1293_vm0, %v1292_v0 }
  0x66   :  { %1167 = vmatprep.subr.bf16.mxu0 %v1294_v1 }
  0x6c   :  { %1099 = vmatmul.mubr.f32.vlgmr.msra.gmra.mrb[0].mxu0 %v1378_v11 }
  0x6d   :  { %1169 = vmatpush3.bf16.msra.mxu0 %v1168_v45  ;;  %1143 = vmatprep.mubr.msk.f32.mxu0 %vm1293_vm0, %v1292_v0 }
  0x6e   :  { %1141 = vmatprep.subr.mxu0 %v1292_v0 }
  0x71   :  { %1142 = vmatpush3.msra.mxu0 %v638_v33 }
  0x72   :  { %1144 = vmatmul.mubr.f32.vlgmr.msra.gmra.mrb[2].mxu0 %v1395_v23 }
 0x119   :  { %v617_v46 = vpop.f32.mrb[0].mxu1 }
 0x11a   :  { %v1109_v47 = vpop.f32.mrb[1].mxu1  ;;  %v618_v49 = vadd.f32 %v1034_v48, %v617_v46 }
 0x121   :  { %v703_v50 = vpop.f32.mrb[2].mxu1 }
 0x122   :  { %v704_v51 = vadd.f32 %v703_v50, %v618_v49  ;;  %v1118_v52 = vpop.f32.mrb[3].mxu1 }
 0x129   :  { %v781_v53 = vpop.f32.mrb[4].mxu1 }
 0x12a   :  { %v782_v54 = vadd.f32 %v781_v53, %v704_v51  ;;  %v1127_v55 = vpop.f32.mrb[5].mxu1 }
 0x12f   :  { %v857_v56 = vpop.f32.mrb[6].mxu1 }
 0x130   :  { %v858_v57 = vadd.f32 %v857_v56, %v782_v54  ;;  %v1136_v58 = vpop.f32.mrb[7].mxu1 }
 0x137   :  { %v1011_v59 = vpop.f32.mrb[8].mxu1 }
 0x138   :  { %v1154_v60 = vpop.f32.mrb[9].mxu1 }
 0x13f   :  { %v521_v61 = vpop.f32.mrb[0].mxu0 }
 0x140   :  { %v1100_v62 = vpop.f32.mrb[1].mxu0  ;;  %v1173_v0 = vadd.f32 %v1033_v63, %v521_v61 }
 0x142   :  { %v525_v4 = vmax.f32 %v1173_v0, 0.0 }
 0x145   :  { %v937_v1 = vpop.f32.mrb[2].mxu0 }
 0x146   :  { %v938_v2 = vadd.f32 %v937_v1, %v858_v57  ;;  %v1145_v3 = vpop.f32.mrb[3].mxu0 }
 0x148   :  { %v1012_v5 = vadd.f32 %v1011_v59, %v938_v2 }
 0x14a   :  { %v1015_v6 = vadd.f32 %v1012_v5, %v525_v4 }
 0x14c   :  { %1016 = vst [vmem:[#allocation8] sm:$0xf] %v1015_v6 }
 0x14d   :  { %1270 = shalt.err (!%p1267_p0)
}
 0x14e   :  { %s1271_s16 = scalar_lea.hbm %s1488_s6, 64 }
 0x14f   :  { %p1272_p1 = scmp.ne.s32.totalorder %s1488_s6, %s1271_s16  ;;  %p1275_p2 = scmp.lt.u32.totalorder %s1271_s16, %s1488_s6 }
 0x151   :  { %p1277_p3 = pnand %p1275_p2, %p1272_p1 }
 0x153   :  { %1280 = shalt.err (!%p1277_p3)
}
 0x154   :  { %1026 = dma.vmem_to_hbm [thread:$0]  %s1024_s13, 64, %s1488_s6, [#allocation4]  }
 0x155   :  { %1285 = dma.done.wait [#allocation4], 64  }
 0x156   :  { %1286 = vsyncadd [#allocation4], 4294967232 }
 0x157   :  { %1030 = vsyncpa [#allocation3], 1 }
 0x158   :  { %1031 = vsyncpa [#allocation6], 1 }
 0x159   :  { %1032 = vsyncpa [#allocation4], 1 }

</bundles_post_ra>
